<compile_context>
chip_gen: v5e
topology: v5e:2x2
jax: 0.10.0
libtpu: 0.0.40
codegen_flags: <defaults>
</compile_context>

<pallas_src>
import functools

import jax
import jax.numpy as jnp
from jax.experimental import pallas as pl
from jax.experimental.pallas import tpu as pltpu


def _make_kernel(comps_resident: bool, ft: int):
    """Build the fused PCA-projection + Mahalanobis kernel.

    grid = (batch tiles ["parallel"], feature-chunk reduction ["arbitrary"]).
    comps_resident: components ref holds the FULL (D_pad, K) matrix in VMEM
    (constant index_map -> DMA'd once); otherwise it is the (ft, K) chunk.
    """

    def kernel(x_ref, comps_ref, bias_ref, mu_ref, invcov_ref, z_ref, dist_ref):
        k = pl.program_id(1)

        @pl.when(k == 0)
        def _():
            # Accumulator lives directly in the z output block (its index_map
            # is constant along the reduction axis). Initializing with -bias
            # folds the StandardScaler mean/scale and the PCA mean into the
            # projection.
            z_ref[...] = jnp.broadcast_to(-bias_ref[...], z_ref.shape)

        if comps_resident:
            off = pl.multiple_of(k * ft, 128)
            c = comps_ref[pl.ds(off, ft), :]
        else:
            c = comps_ref[...]

        # Partial PCA projection for this feature chunk: (TB, TD) @ (TD, K).
        # Operands stay in their stored dtype (bf16 stays bf16 on the MXU);
        # accumulation is f32 via preferred_element_type + the f32 z block.
        z_ref[...] += jnp.dot(x_ref[...], c, preferred_element_type=jnp.float32)

        @pl.when(k == pl.num_programs(1) - 1)
        def _():
            # Mahalanobis distance on the reduced activations.
            zc = z_ref[...] - mu_ref[...]
            m = jnp.dot(zc, invcov_ref[...], preferred_element_type=jnp.float32)
            d2 = jnp.sum(m * zc, axis=1, keepdims=True)
            dist_ref[...] = jnp.sqrt(jnp.maximum(d2, 0.0))  # clamp f32 noise

    return kernel


def _round_up(n, m):
    return (n + m - 1) // m * m


def fold_adapter_params(scaler_mean, scaler_scale, pca_mean, components):
    """One-time fold of the fitted StandardScaler + PCA constants.

    z = ((x - s_mean)/s_scale - p_mean) @ C.T
      = x @ (C / s_scale).T  -  (s_mean/s_scale + p_mean) @ C.T
    Do this once at model-load time, not per forward call.
    """
    # sklearn StandardScaler treats zero variance as scale == 1.
    scale = jnp.where(scaler_scale == 0, 1.0, scaler_scale).astype(jnp.float32)
    comps_f32 = components.astype(jnp.float32)                     # (K, D)
    comps_scaled = (comps_f32 / scale[None, :]).T                  # (D, K)
    bias = (scaler_mean.astype(jnp.float32) / scale
            + pca_mean.astype(jnp.float32)) @ comps_f32.T          # (K,)
    # Keep the streamed matrix in the model's storage dtype (bf16 models stay
    # bf16 on the HBM->VMEM path; the kernel accumulates in f32 regardless).
    return comps_scaled.astype(components.dtype), bias.reshape(1, -1)


def dim_reduct_adapter_forward(x, comps_scaled, bias, mu, inv_cov, *,
                               feat_tile=4096, batch_tile=128):
    """x: (B, C, H, W). Returns (mahalanobis_dist (B,), reduced_acts (B, K))."""
    B = x.shape[0]
    x2 = x.reshape(B, -1)                 # torch .contiguous().view(B, -1); no upcast
    D = x2.shape[1]
    K = comps_scaled.shape[1]

    # ---- tile / pad geometry (sublane-dense rows, lane-aligned feature tiles)
    B8 = _round_up(B, 8)
    if B8 >= 16:
        # Guarantee >= 2 blocks on the "parallel" batch axis so v7x's second
        # TensorCore gets work even for modest batch sizes.
        TB = min(batch_tile, _round_up(pl.cdiv(B8, 2), 8))
    else:
        TB = B8
    B_pad = _round_up(B8, TB)

    ft = _round_up(min(feat_tile, _round_up(D, 128)), 128)
    D_pad = _round_up(D, ft)

    if (B_pad, D_pad) != (B, D):
        x2 = jnp.pad(x2, ((0, B_pad - B), (0, D_pad - D)))
    comps_p = comps_scaled
    if D_pad != D:
        comps_p = jnp.pad(comps_p, ((0, D_pad - D), (0, 0)))

    bias2 = bias.reshape(1, K).astype(jnp.float32)
    mu2 = mu.reshape(1, K).astype(jnp.float32)
    invcov = inv_cov.astype(jnp.float32)

    bx = jnp.dtype(x2.dtype).itemsize
    bc = jnp.dtype(comps_p.dtype).itemsize

    # Keep the folded components fully VMEM-resident (DMA'd once, constant
    # index_map) when small; otherwise stream (ft, K) chunks per grid step.
    comps_resident = (D_pad * K * bc) <= 4 * 1024 * 1024
    if comps_resident:
        comps_spec = pl.BlockSpec((D_pad, K), lambda b, k: (0, 0))
        comps_vmem = 2 * D_pad * K * bc      # conservative: assume double-buffered
    else:
        comps_spec = pl.BlockSpec((ft, K), lambda b, k: (k, 0))
        comps_vmem = 2 * ft * K * bc

    grid = (pl.cdiv(B_pad, TB), pl.cdiv(D_pad, ft))

    # Explicit VMEM budget: double-buffered x stream + comps + resident outputs.
    vmem_est = (2 * TB * ft * bx + comps_vmem
                + 2 * (TB * K + TB) * 4
                + 2 * (2 * K + K * K) * 4)
    cp_kwargs = {"dimension_semantics": ("parallel", "arbitrary")}
    if vmem_est > 12 * 1024 * 1024:       # above the default scoped VMEM range
        cap = 48 * 1024 * 1024            # safe on v7x (64 MiB VMEM per TC)
        try:
            cap = min(int(pltpu.get_tpu_info().vmem_capacity_bytes * 3 // 4),
                      64 * 1024 * 1024)   # v5e/v6e (128 MiB) -> 64 MiB cap
        except Exception:
            pass
        cp_kwargs["vmem_limit_bytes"] = min(max(2 * vmem_est, 16 * 1024 * 1024), cap)

    kernel = _make_kernel(comps_resident, ft)

    z_pad, dist_pad = pl.pallas_call(
        kernel,
        out_shape=(jax.ShapeDtypeStruct((B_pad, K), jnp.float32),
                   jax.ShapeDtypeStruct((B_pad, 1), jnp.float32)),
        grid_spec=pltpu.PrefetchScalarGridSpec(
            num_scalar_prefetch=0,
            grid=grid,
            in_specs=[
                pl.BlockSpec((TB, ft), lambda b, k: (b, k)),   # x chunk
                comps_spec,                                    # folded components
                pl.BlockSpec((1, K), lambda b, k: (0, 0)),     # folded bias
                pl.BlockSpec((1, K), lambda b, k: (0, 0)),     # gaussian mu
                pl.BlockSpec((K, K), lambda b, k: (0, 0)),     # inv_cov
            ],
            out_specs=[
                pl.BlockSpec((TB, K), lambda b, k: (b, 0)),    # reduced acts (accumulator)
                pl.BlockSpec((TB, 1), lambda b, k: (b, 0)),    # mahalanobis dist
            ],
        ),
        compiler_params=pltpu.CompilerParams(**cp_kwargs),
    )(x2, comps_p, bias2, mu2, invcov)

    return dist_pad[:B, 0], z_pad[:B]


def _reference(x, scaler_mean, scaler_scale, pca_mean, components, mu, inv_cov):
    B = x.shape[0]
    x2 = x.reshape(B, -1).astype(jnp.float32)
    scale = jnp.where(scaler_scale == 0, 1.0, scaler_scale)
    xs = (x2 - scaler_mean[None, :]) / scale[None, :]
    z = (xs - pca_mean[None, :]) @ components.T
    zc = z - mu[None, :]
    dist = jnp.sqrt(jnp.sum((zc @ inv_cov) * zc, axis=1))
    return dist, z


if __name__ == "__main__":
    B, C, H, W = 2, 4, 16, 16          # batch_size=2, small NCHW activation
    D = C * H * W                      # 1024 flattened features
    K = 32                             # n_dims (PCA components)

    key = jax.random.PRNGKey(0)
    kx, ksm, kss, kpm, kcp, kmu, kic = jax.random.split(key, 7)

    x = jax.random.normal(kx, (B, C, H, W), dtype=jnp.float32)

    # Deterministic synthetic "fitted" parameters (shapes per sklearn objects).
    scaler_mean = 0.1 * jax.random.normal(ksm, (D,), dtype=jnp.float32)
    scaler_scale = 0.5 + jax.random.uniform(kss, (D,), dtype=jnp.float32)  # > 0
    pca_mean = 0.05 * jax.random.normal(kpm, (D,), dtype=jnp.float32)
    components = jax.random.normal(kcp, (K, D), dtype=jnp.float32) / jnp.sqrt(D)
    mu = 0.1 * jax.random.normal(kmu, (K,), dtype=jnp.float32)
    a = jax.random.normal(kic, (K, K), dtype=jnp.float32)
    inv_cov = a @ a.T / K + 0.5 * jnp.eye(K, dtype=jnp.float32)  # SPD

    # One-time constant folding (load-time), then the fused forward.
    comps_scaled, bias = fold_adapter_params(
        scaler_mean, scaler_scale, pca_mean, components)
    dist, z = dim_reduct_adapter_forward(x, comps_scaled, bias, mu, inv_cov)
    jax.block_until_ready((dist, z))

    ref_dist, ref_z = _reference(
        x, scaler_mean, scaler_scale, pca_mean, components, mu, inv_cov)

    assert dist.shape == (B,) and z.shape == (B, K)
    assert jnp.allclose(z, ref_z, rtol=2e-3, atol=2e-3)
    assert jnp.allclose(dist, ref_dist, rtol=2e-3, atol=2e-3)

    print("KERNEL_OK")
</pallas_src>

<mosaic_0001>
module attributes {stable_mosaic.version = 11 : i64} {
  func.func @kernel(%arg0: i32, %arg1: i32, %arg2: memref<8x1024xf32, #tpu.memory_space<vmem>>, %arg3: memref<1024x32xf32, #tpu.memory_space<vmem>>, %arg4: memref<1x32xf32, #tpu.memory_space<vmem>>, %arg5: memref<1x32xf32, #tpu.memory_space<vmem>>, %arg6: memref<32x32xf32, #tpu.memory_space<vmem>>, %arg7: memref<8x32xf32, #tpu.memory_space<vmem>>, %arg8: memref<8x1xf32, #tpu.memory_space<vmem>>) attributes {dimension_semantics = [#tpu.dimension_semantics<parallel>, #tpu.dimension_semantics<arbitrary>], iteration_bounds = array<i64: 1, 1>, scalar_prefetch = 0 : i64, scratch_operands = 0 : i64, tpu.core_type = #tpu.core_type<tc>, window_params = [{transform_indices = @transform_0, window_bounds = array<i64: 8, 1024>}, {pipeline_mode = #tpu.pipeline_mode<synchronous>, transform_indices = @transform_1, window_bounds = array<i64: 1024, 32>}, {pipeline_mode = #tpu.pipeline_mode<synchronous>, transform_indices = @transform_2, window_bounds = array<i64: 1, 32>}, {pipeline_mode = #tpu.pipeline_mode<synchronous>, transform_indices = @transform_3, window_bounds = array<i64: 1, 32>}, {pipeline_mode = #tpu.pipeline_mode<synchronous>, transform_indices = @transform_4, window_bounds = array<i64: 32, 32>}, {transform_indices = @transform_5, window_bounds = array<i64: 8, 32>}, {transform_indices = @transform_6, window_bounds = array<i64: 8, 1>}]} {
    %c0_i32 = arith.constant 0 : i32
    %0 = arith.cmpi eq, %arg1, %c0_i32 : i32
    %1 = arith.extui %0 : i1 to i32
    %c0_i32_0 = arith.constant 0 : i32
    %2 = arith.cmpi ne, %1, %c0_i32_0 : i32
    scf.if %2 {
      %c0_9 = arith.constant 0 : index
      %c0_10 = arith.constant 0 : index
      %15 = vector.load %arg4[%c0_9, %c0_10] : memref<1x32xf32, #tpu.memory_space<vmem>>, vector<1x32xf32>
      %cst_11 = arith.constant 0.000000e+00 : f32
      %16 = vector.broadcast %cst_11 : f32 to vector<1x32xf32>
      %17 = arith.subf %16, %15 : vector<1x32xf32>
      %18 = vector.shape_cast %17 : vector<1x32xf32> to vector<1x32xf32>
      %19 = vector.broadcast %18 : vector<1x32xf32> to vector<8x32xf32>
      %c0_12 = arith.constant 0 : index
      %c0_13 = arith.constant 0 : index
      %20 = vector.load %arg7[%c0_12, %c0_13] : memref<8x32xf32, #tpu.memory_space<vmem>>, vector<8x32xf32>
      tpu.vector_store %arg7[%c0_12, %c0_13], %19 {strides = array<i32>} : memref<8x32xf32, #tpu.memory_space<vmem>>, vector<8x32xf32>,
    } else {
    }
    %c1024_i32 = arith.constant 1024 : i32
    %3 = arith.muli %arg1, %c1024_i32 : i32
    %4 = tpu.assume_multiple %3, 128 : i32
    %5 = arith.index_cast %4 : i32 to index
    %c0 = arith.constant 0 : index
    %6 = vector.load %arg3[%5, %c0] : memref<1024x32xf32, #tpu.memory_space<vmem>>, vector<1024x32xf32>
    %c0_1 = arith.constant 0 : index
    %c0_2 = arith.constant 0 : index
    %7 = vector.load %arg7[%c0_1, %c0_2] : memref<8x32xf32, #tpu.memory_space<vmem>>, vector<8x32xf32>
    %c0_3 = arith.constant 0 : index
    %c0_4 = arith.constant 0 : index
    %8 = vector.load %arg2[%c0_3, %c0_4] : memref<8x1024xf32, #tpu.memory_space<vmem>>, vector<8x1024xf32>
    %cst = arith.constant dense<0.000000e+00> : vector<8x32xf32>
    %9 = tpu.matmul %8, %6, %cst {dimension_numbers = #tpu.dot_dimension_numbers<[1], [0], [0], [1], [0, 0, 1, 1], [], []>} : vector<8x1024xf32>, vector<1024x32xf32>, vector<8x32xf32> -> vector<8x32xf32>
    %10 = arith.addf %7, %9 : vector<8x32xf32>
    %c0_5 = arith.constant 0 : index
    %c0_6 = arith.constant 0 : index
    %11 = vector.load %arg7[%c0_5, %c0_6] : memref<8x32xf32, #tpu.memory_space<vmem>>, vector<8x32xf32>
    tpu.vector_store %arg7[%c0_5, %c0_6], %10 {strides = array<i32>} : memref<8x32xf32, #tpu.memory_space<vmem>>, vector<8x32xf32>,
    %c0_i32_7 = arith.constant 0 : i32
    %12 = arith.cmpi eq, %arg1, %c0_i32_7 : i32
    %13 = arith.extui %12 : i1 to i32
    %c0_i32_8 = arith.constant 0 : i32
    %14 = arith.cmpi ne, %13, %c0_i32_8 : i32
    scf.if %14 {
      %c0_9 = arith.constant 0 : index
      %c0_10 = arith.constant 0 : index
      %15 = vector.load %arg7[%c0_9, %c0_10] : memref<8x32xf32, #tpu.memory_space<vmem>>, vector<8x32xf32>
      %c0_11 = arith.constant 0 : index
      %c0_12 = arith.constant 0 : index
      %16 = vector.load %arg5[%c0_11, %c0_12] : memref<1x32xf32, #tpu.memory_space<vmem>>, vector<1x32xf32>
      %17 = vector.broadcast %16 : vector<1x32xf32> to vector<8x32xf32>
      %18 = arith.subf %15, %17 : vector<8x32xf32>
      %c0_13 = arith.constant 0 : index
      %c0_14 = arith.constant 0 : index
      %19 = vector.load %arg6[%c0_13, %c0_14] : memref<32x32xf32, #tpu.memory_space<vmem>>, vector<32x32xf32>
      %cst_15 = arith.constant dense<0.000000e+00> : vector<8x32xf32>
      %20 = tpu.matmul %18, %19, %cst_15 {dimension_numbers = #tpu.dot_dimension_numbers<[1], [0], [0], [1], [0, 0, 1, 1], [], []>} : vector<8x32xf32>, vector<32x32xf32>, vector<8x32xf32> -> vector<8x32xf32>
      %21 = arith.mulf %20, %18 : vector<8x32xf32>
      %cst_16 = arith.constant dense<0.000000e+00> : vector<8xf32>
      %22 = vector.multi_reduction <add>, %21, %cst_16 [1] : vector<8x32xf32> to vector<8xf32>
      %23 = vector.shape_cast %22 : vector<8xf32> to vector<8x1xf32>
      %cst_17 = arith.constant 0.000000e+00 : f32
      %24 = vector.broadcast %cst_17 : f32 to vector<8x1xf32>
      %25 = arith.maximumf %23, %24 : vector<8x1xf32>
      %26 = math.sqrt %25 : vector<8x1xf32>
      %c0_18 = arith.constant 0 : index
      %c0_19 = arith.constant 0 : index
      %27 = vector.load %arg8[%c0_18, %c0_19] : memref<8x1xf32, #tpu.memory_space<vmem>>, vector<8x1xf32>
      tpu.vector_store %arg8[%c0_18, %c0_19], %26 {strides = array<i32>} : memref<8x1xf32, #tpu.memory_space<vmem>>, vector<8x1xf32>,
    } else {
    }
    return
  }
  func.func @transform_0(%arg0: i32, %arg1: i32) -> (i32, i32) {
    %c0_i32 = arith.constant 0 : i32
    return %arg0, %arg1 : i32, i32
  }
  func.func @transform_1(%arg0: i32, %arg1: i32) -> (i32, i32) {
    %c0_i32 = arith.constant 0 : i32
    %c0_i32_0 = arith.constant 0 : i32
    %c0_i32_1 = arith.constant 0 : i32
    return %c0_i32, %c0_i32_0 : i32, i32
  }
  func.func @transform_2(%arg0: i32, %arg1: i32) -> (i32, i32) {
    %c0_i32 = arith.constant 0 : i32
    %c0_i32_0 = arith.constant 0 : i32
    %c0_i32_1 = arith.constant 0 : i32
    return %c0_i32, %c0_i32_0 : i32, i32
  }
  func.func @transform_3(%arg0: i32, %arg1: i32) -> (i32, i32) {
    %c0_i32 = arith.constant 0 : i32
    %c0_i32_0 = arith.constant 0 : i32
    %c0_i32_1 = arith.constant 0 : i32
    return %c0_i32, %c0_i32_0 : i32, i32
  }
  func.func @transform_4(%arg0: i32, %arg1: i32) -> (i32, i32) {
    %c0_i32 = arith.constant 0 : i32
    %c0_i32_0 = arith.constant 0 : i32
    %c0_i32_1 = arith.constant 0 : i32
    return %c0_i32, %c0_i32_0 : i32, i32
  }
  func.func @transform_5(%arg0: i32, %arg1: i32) -> (i32, i32) {
    %c0_i32 = arith.constant 0 : i32
    %c0_i32_0 = arith.constant 0 : i32
    return %arg0, %c0_i32 : i32, i32
  }
  func.func @transform_6(%arg0: i32, %arg1: i32) -> (i32, i32) {
    %c0_i32 = arith.constant 0 : i32
    %c0_i32_0 = arith.constant 0 : i32
    return %arg0, %c0_i32 : i32, i32
  }
}

</mosaic_0001>

<bundles_post_ra>
// kernel: tpu_custom_call.1
= control target key start
LH: loop header
LB: loop body
LE: loop exit
PB: predicated region body
PF: predicated region fallthrough
CT: control target
= control target key end

     0   :  { %s914_s0 = inlined_call_operand.vmem [shape: f32[8,1024], index: 0, kind: input, shape index: {}]   ;;  %s915_s1 = inlined_call_operand.vmem [shape: f32[1024,32], index: 1, kind: input, shape index: {}]   ;;  %s916_s2 = inlined_call_operand.vmem [shape: f32[1,32], index: 2, kind: input, shape index: {}]   ;;  %s917_s3 = inlined_call_operand.vmem [shape: f32[1,32], index: 3, kind: input, shape index: {}]   ;;  %s918_s4 = inlined_call_operand.vmem [shape: f32[32,32], index: 4, kind: input, shape index: {}]   ;;  %s919_s5 = inlined_call_operand.hbm [shape: f32[8,32], index: 5, kind: output, shape index: {0}]   ;;  %s920_s6 = inlined_call_operand.vmem [shape: f32[8,1], index: 6, kind: output, shape index: {1}]  }
   0x1   :  { %v51_v0 = vld [vmem:[%s915_s1 + $0x78] sm:$0xff]  ;;  %v50_v2 = vld [vmem:[%s915_s1 + $0x70] sm:$0xff]  ;;  %v49_v6 = vld [vmem:[%s915_s1 + $0x68] sm:$0xff] }
   0x2   :  { %v83_v1 = vld [vmem:[%s915_s1 + $0x178] sm:$0xff]  ;;  %173 = vmatpush.msra.mxu0 %v51_v0  ;;  %v82_v4 = vld [vmem:[%s915_s1 + $0x170] sm:$0xff]  ;;  %v81_v8 = vld [vmem:[%s915_s1 + $0x168] sm:$0xff] }
   0x3   :  { %213 = vmatpush.msra.mxu2 %v83_v1  ;;  %v67_v3 = vld [vmem:[%s915_s1 + $0xf8] sm:$0xff]  ;;  %v66_v7 = vld [vmem:[%s915_s1 + $0xf0] sm:$0xff]  ;;  %v65_v10 = vld [vmem:[%s915_s1 + $0xe8] sm:$0xff] }
   0x4   :  { %v99_v5 = vld [vmem:[%s915_s1 + $0x1f8] sm:$0xff]  ;;  %193 = vmatpush.msra.mxu1 %v67_v3  ;;  %174 = vmatpush.msra.mxu0 %v50_v2  ;;  %v98_v9 = vld [vmem:[%s915_s1 + $0x1f0] sm:$0xff]  ;;  %v48_v11 = vld [vmem:[%s915_s1 + $0x60] sm:$0xff] }
   0x5   :  { %233 = vmatpush.msra.mxu3 %v99_v5  ;;  %214 = vmatpush.msra.mxu2 %v82_v4  ;;  %v80_v12 = vld [vmem:[%s915_s1 + $0x160] sm:$0xff]  ;;  %v97_v13 = vld [vmem:[%s915_s1 + $0x1e8] sm:$0xff]  ;;  %v47_v16 = vld [vmem:[%s915_s1 + $0x58] sm:$0xff] }
   0x6   :  { %194 = vmatpush.msra.mxu1 %v66_v7  ;;  %175 = vmatpush.msra.mxu0 %v49_v6  ;;  %v64_v14 = vld [vmem:[%s915_s1 + $0xe0] sm:$0xff]  ;;  %v79_v17 = vld [vmem:[%s915_s1 + $0x158] sm:$0xff]  ;;  %v46_v20 = vld [vmem:[%s915_s1 + $0x50] sm:$0xff] }
   0x7   :  { %234 = vmatpush.msra.mxu3 %v98_v9  ;;  %215 = vmatpush.msra.mxu2 %v81_v8  ;;  %v96_v15 = vld [vmem:[%s915_s1 + $0x1e0] sm:$0xff]  ;;  %v63_v18 = vld [vmem:[%s915_s1 + $0xd8] sm:$0xff]  ;;  %v78_v21 = vld [vmem:[%s915_s1 + $0x150] sm:$0xff] }
   0x8   :  { %195 = vmatpush.msra.mxu1 %v65_v10  ;;  %176 = vmatpush.msra.mxu0 %v48_v11  ;;  %v95_v19 = vld [vmem:[%s915_s1 + $0x1d8] sm:$0xff]  ;;  %v62_v22 = vld [vmem:[%s915_s1 + $0xd0] sm:$0xff]  ;;  %v45_v24 = vld [vmem:[%s915_s1 + $0x48] sm:$0xff] }
   0x9   :  { %235 = vmatpush.msra.mxu3 %v97_v13  ;;  %216 = vmatpush.msra.mxu2 %v80_v12  ;;  %v94_v23 = vld [vmem:[%s915_s1 + $0x1d0] sm:$0xff]  ;;  %v77_v25 = vld [vmem:[%s915_s1 + $0x148] sm:$0xff]  ;;  %v44_v28 = vld [vmem:[%s915_s1 + $0x40] sm:$0xff] }
   0xa   :  { %196 = vmatpush.msra.mxu1 %v64_v14  ;;  %177 = vmatpush.msra.mxu0 %v47_v16  ;;  %v61_v26 = vld [vmem:[%s915_s1 + $0xc8] sm:$0xff]  ;;  %v76_v29 = vld [vmem:[%s915_s1 + $0x140] sm:$0xff]  ;;  %v43_v32 = vld [vmem:[%s915_s1 + $0x38] sm:$0xff] }
   0xb   :  { %236 = vmatpush.msra.mxu3 %v96_v15  ;;  %217 = vmatpush.msra.mxu2 %v79_v17  ;;  %v93_v27 = vld [vmem:[%s915_s1 + $0x1c8] sm:$0xff]  ;;  %v60_v30 = vld [vmem:[%s915_s1 + $0xc0] sm:$0xff]  ;;  %v75_v33 = vld [vmem:[%s915_s1 + $0x138] sm:$0xff] }
   0xc   :  { %197 = vmatpush.msra.mxu1 %v63_v18  ;;  %178 = vmatpush.msra.mxu0 %v46_v20  ;;  %v92_v31 = vld [vmem:[%s915_s1 + $0x1c0] sm:$0xff]  ;;  %v59_v34 = vld [vmem:[%s915_s1 + $0xb8] sm:$0xff]  ;;  %v42_v36 = vld [vmem:[%s915_s1 + $0x30] sm:$0xff] }
   0xd   :  { %237 = vmatpush.msra.mxu3 %v95_v19  ;;  %218 = vmatpush.msra.mxu2 %v78_v21  ;;  %v91_v35 = vld [vmem:[%s915_s1 + $0x1b8] sm:$0xff]  ;;  %v74_v37 = vld [vmem:[%s915_s1 + $0x130] sm:$0xff]  ;;  %v41_v40 = vld [vmem:[%s915_s1 + $0x28] sm:$0xff] }
   0xe   :  { %198 = vmatpush.msra.mxu1 %v62_v22  ;;  %179 = vmatpush.msra.mxu0 %v45_v24  ;;  %v58_v38 = vld [vmem:[%s915_s1 + $0xb0] sm:$0xff]  ;;  %v73_v41 = vld [vmem:[%s915_s1 + $0x128] sm:$0xff]  ;;  %v40_v44 = vld [vmem:[%s915_s1 + $0x20] sm:$0xff] }
   0xf   :  { %238 = vmatpush.msra.mxu3 %v94_v23  ;;  %219 = vmatpush.msra.mxu2 %v77_v25  ;;  %v90_v39 = vld [vmem:[%s915_s1 + $0x1b0] sm:$0xff]  ;;  %v57_v42 = vld [vmem:[%s915_s1 + $0xa8] sm:$0xff]  ;;  %v72_v45 = vld [vmem:[%s915_s1 + $0x120] sm:$0xff] }
  0x10   :  { %199 = vmatpush.msra.mxu1 %v61_v26  ;;  %180 = vmatpush.msra.mxu0 %v44_v28  ;;  %v89_v43 = vld [vmem:[%s915_s1 + $0x1a8] sm:$0xff]  ;;  %v56_v46 = vld [vmem:[%s915_s1 + $0xa0] sm:$0xff]  ;;  %v39_v48 = vld [vmem:[%s915_s1 + $0x18] sm:$0xff] }
  0x11   :  { %239 = vmatpush.msra.mxu3 %v93_v27  ;;  %220 = vmatpush.msra.mxu2 %v76_v29  ;;  %v88_v47 = vld [vmem:[%s915_s1 + $0x1a0] sm:$0xff]  ;;  %v71_v49 = vld [vmem:[%s915_s1 + $0x118] sm:$0xff]  ;;  %v38_v52 = vld [vmem:[%s915_s1 + $0x10] sm:$0xff] }
  0x12   :  { %200 = vmatpush.msra.mxu1 %v60_v30  ;;  %181 = vmatpush.msra.mxu0 %v43_v32  ;;  %v55_v50 = vld [vmem:[%s915_s1 + $0x98] sm:$0xff]  ;;  %v70_v53 = vld [vmem:[%s915_s1 + $0x110] sm:$0xff]  ;;  %v37_v56 = vld [vmem:[%s915_s1 + $0x8] sm:$0xff] }
  0x13   :  { %240 = vmatpush.msra.mxu3 %v92_v31  ;;  %221 = vmatpush.msra.mxu2 %v75_v33  ;;  %v87_v51 = vld [vmem:[%s915_s1 + $0x198] sm:$0xff]  ;;  %v54_v54 = vld [vmem:[%s915_s1 + $0x90] sm:$0xff]  ;;  %v69_v57 = vld [vmem:[%s915_s1 + $0x108] sm:$0xff] }
  0x14   :  { %201 = vmatpush.msra.mxu1 %v59_v34  ;;  %182 = vmatpush.msra.mxu0 %v42_v36  ;;  %v86_v55 = vld [vmem:[%s915_s1 + $0x190] sm:$0xff]  ;;  %v53_v58 = vld [vmem:[%s915_s1 + $0x88] sm:$0xff]  ;;  %v36_v60 = vld [vmem:[%s915_s1] sm:$0xff] }
  0x15   :  { %241 = vmatpush.msra.mxu3 %v91_v35  ;;  %222 = vmatpush.msra.mxu2 %v74_v37  ;;  %v85_v59 = vld [vmem:[%s915_s1 + $0x188] sm:$0xff]  ;;  %v68_v61 = vld [vmem:[%s915_s1 + $0x100] sm:$0xff]  ;;  %v115_v62 = vld [vmem:[%s915_s1 + $0x278] sm:$0xff] }
  0x16   :  { %202 = vmatpush.msra.mxu1 %v58_v38  ;;  %183 = vmatpush.msra.mxu0 %v41_v40  ;;  %v147_v63 = vld [vmem:[%s915_s1 + $0x378] sm:$0xff]  ;;  %v52_v0 = vld [vmem:[%s915_s1 + $0x80] sm:$0xff]  ;;  %v114_v2 = vld [vmem:[%s915_s1 + $0x270] sm:$0xff] }
  0x17   :  { %242 = vmatpush.msra.mxu3 %v90_v39  ;;  %223 = vmatpush.msra.mxu2 %v73_v41  ;;  %v84_v1 = vld [vmem:[%s915_s1 + $0x180] sm:$0xff]  ;;  %v131_v3 = vld [vmem:[%s915_s1 + $0x2f8] sm:$0xff]  ;;  %v146_v4 = vld [vmem:[%s915_s1 + $0x370] sm:$0xff] }
  0x18   :  { %203 = vmatpush.msra.mxu1 %v57_v42  ;;  %184 = vmatpush.msra.mxu0 %v40_v44  ;;  %v163_v5 = vld [vmem:[%s915_s1 + $0x3f8] sm:$0xff]  ;;  %v113_v6 = vld [vmem:[%s915_s1 + $0x268] sm:$0xff]  ;;  %v130_v7 = vld [vmem:[%s915_s1 + $0x2f0] sm:$0xff] }
  0x19   :  { %243 = vmatpush.msra.mxu3 %v89_v43  ;;  %224 = vmatpush.msra.mxu2 %v72_v45  ;;  %v145_v8 = vld [vmem:[%s915_s1 + $0x368] sm:$0xff]  ;;  %v162_v9 = vld [vmem:[%s915_s1 + $0x3f0] sm:$0xff]  ;;  %v112_v10 = vld [vmem:[%s915_s1 + $0x260] sm:$0xff] }
  0x1a   :  { %204 = vmatpush.msra.mxu1 %v56_v46  ;;  %185 = vmatpush.msra.mxu0 %v39_v48  ;;  %v129_v11 = vld [vmem:[%s915_s1 + $0x2e8] sm:$0xff]  ;;  %v144_v12 = vld [vmem:[%s915_s1 + $0x360] sm:$0xff]  ;;  %v111_v14 = vld [vmem:[%s915_s1 + $0x258] sm:$0xff] }
  0x1b   :  { %244 = vmatpush.msra.mxu3 %v88_v47  ;;  %225 = vmatpush.msra.mxu2 %v71_v49  ;;  %v161_v13 = vld [vmem:[%s915_s1 + $0x3e8] sm:$0xff]  ;;  %v128_v15 = vld [vmem:[%s915_s1 + $0x2e0] sm:$0xff]  ;;  %v143_v16 = vld [vmem:[%s915_s1 + $0x358] sm:$0xff] }
  0x1c   :  { %205 = vmatpush.msra.mxu1 %v55_v50  ;;  %186 = vmatpush.msra.mxu0 %v38_v52  ;;  %v160_v17 = vld [vmem:[%s915_s1 + $0x3e0] sm:$0xff]  ;;  %v110_v18 = vld [vmem:[%s915_s1 + $0x250] sm:$0xff]  ;;  %v127_v19 = vld [vmem:[%s915_s1 + $0x2d8] sm:$0xff] }
  0x1d   :  { %245 = vmatpush.msra.mxu3 %v87_v51  ;;  %226 = vmatpush.msra.mxu2 %v70_v53  ;;  %v142_v20 = vld [vmem:[%s915_s1 + $0x350] sm:$0xff]  ;;  %v159_v21 = vld [vmem:[%s915_s1 + $0x3d8] sm:$0xff]  ;;  %v109_v22 = vld [vmem:[%s915_s1 + $0x248] sm:$0xff] }
  0x1e   :  { %206 = vmatpush.msra.mxu1 %v54_v54  ;;  %187 = vmatpush.msra.mxu0 %v37_v56  ;;  %v126_v23 = vld [vmem:[%s915_s1 + $0x2d0] sm:$0xff]  ;;  %v141_v24 = vld [vmem:[%s915_s1 + $0x348] sm:$0xff]  ;;  %v108_v26 = vld [vmem:[%s915_s1 + $0x240] sm:$0xff] }
  0x1f   :  { %246 = vmatpush.msra.mxu3 %v86_v55  ;;  %227 = vmatpush.msra.mxu2 %v69_v57  ;;  %v158_v25 = vld [vmem:[%s915_s1 + $0x3d0] sm:$0xff]  ;;  %v125_v27 = vld [vmem:[%s915_s1 + $0x2c8] sm:$0xff]  ;;  %v140_v28 = vld [vmem:[%s915_s1 + $0x340] sm:$0xff] }
  0x20   :  { %207 = vmatpush.msra.mxu1 %v53_v58  ;;  %188 = vmatpush.msra.mxu0 %v36_v60  ;;  %v157_v29 = vld [vmem:[%s915_s1 + $0x3c8] sm:$0xff]  ;;  %v107_v30 = vld [vmem:[%s915_s1 + $0x238] sm:$0xff]  ;;  %v124_v31 = vld [vmem:[%s915_s1 + $0x2c0] sm:$0xff] }
  0x21   :  { %247 = vmatpush.msra.mxu3 %v85_v59  ;;  %228 = vmatpush.msra.mxu2 %v68_v61 }
  0x22   :  { %253 = vmatpush.msrb.mxu0 %v115_v62  ;;  %208 = vmatpush.msra.mxu1 %v52_v0 }
  0x23   :  { %293 = vmatpush.msrb.mxu2 %v147_v63  ;;  %248 = vmatpush.msra.mxu3 %v84_v1 }
  0x24   :  { %254 = vmatpush.msrb.mxu0 %v114_v2  ;;  %273 = vmatpush.msrb.mxu1 %v131_v3 }
  0x25   :  { %294 = vmatpush.msrb.mxu2 %v146_v4  ;;  %313 = vmatpush.msrb.mxu3 %v163_v5 }
  0x26   :  { %255 = vmatpush.msrb.mxu0 %v113_v6  ;;  %274 = vmatpush.msrb.mxu1 %v130_v7 }
  0x27   :  { %295 = vmatpush.msrb.mxu2 %v145_v8  ;;  %314 = vmatpush.msrb.mxu3 %v162_v9 }
  0x28   :  { %256 = vmatpush.msrb.mxu0 %v112_v10  ;;  %275 = vmatpush.msrb.mxu1 %v129_v11 }
  0x29   :  { %296 = vmatpush.msrb.mxu2 %v144_v12  ;;  %315 = vmatpush.msrb.mxu3 %v161_v13 }
  0x2a   :  { %257 = vmatpush.msrb.mxu0 %v111_v14  ;;  %276 = vmatpush.msrb.mxu1 %v128_v15 }
  0x2b   :  { %297 = vmatpush.msrb.mxu2 %v143_v16  ;;  %316 = vmatpush.msrb.mxu3 %v160_v17 }
  0x2c   :  { %258 = vmatpush.msrb.mxu0 %v110_v18  ;;  %277 = vmatpush.msrb.mxu1 %v127_v19 }
  0x2d   :  { %298 = vmatpush.msrb.mxu2 %v142_v20  ;;  %317 = vmatpush.msrb.mxu3 %v159_v21 }
  0x2e   :  { %259 = vmatpush.msrb.mxu0 %v109_v22  ;;  %278 = vmatpush.msrb.mxu1 %v126_v23 }
  0x2f   :  { %299 = vmatpush.msrb.mxu2 %v141_v24  ;;  %318 = vmatpush.msrb.mxu3 %v158_v25 }
  0x30   :  { %12 = vsyncpa [#allocation3], 0  ;;  %260 = vmatpush.msrb.mxu0 %v108_v26  ;;  %279 = vmatpush.msrb.mxu1 %v125_v27  ;;  %v139_v32 = vld [vmem:[%s915_s1 + $0x338] sm:$0xff]  ;;  %v156_v33 = vld [vmem:[%s915_s1 + $0x3c0] sm:$0xff]  ;;  %vm32_vm0 = vcmask 261120   ;;  %s442_s13 = smov [#allocation2]  }
  0x31   :  { %300 = vmatpush.msrb.mxu2 %v140_v28  ;;  %319 = vmatpush.msrb.mxu3 %v157_v29  ;;  %v106_v34 = vld [vmem:[%s915_s1 + $0x230] sm:$0xff]  ;;  %v123_v35 = vld [vmem:[%s915_s1 + $0x2b8] sm:$0xff]  ;;  %v105_v38 = vld [vmem:[%s915_s1 + $0x228] sm:$0xff]  ;;  %s396_s14 = sshll.u32 %s442_s13, 4  ;;  %s398_s17 = sshll.u32 %s919_s5, 4  ;;  %vm389_vm2 = vcmask 7168   ;;  %s397_s14 = int_to_ptr.vmem [resolvable:$true] %s396_s14  ;;  %s399_s17 = int_to_ptr.hbm [resolvable:$true] %s398_s17 }
  0x32   :  { %261 = vmatpush.msrb.mxu0 %v107_v30  ;;  %280 = vmatpush.msrb.mxu1 %v124_v31  ;;  %v138_v36 = vld [vmem:[%s915_s1 + $0x330] sm:$0xff]  ;;  %v155_v37 = vld [vmem:[%s915_s1 + $0x3b8] sm:$0xff]  ;;  %v137_v40 = vld [vmem:[%s915_s1 + $0x328] sm:$0xff] }
  0x33   :  { %301 = vmatpush.msrb.mxu2 %v139_v32  ;;  %320 = vmatpush.msrb.mxu3 %v156_v33  ;;  %v122_v39 = vld [vmem:[%s915_s1 + $0x2b0] sm:$0xff]  ;;  %v104_v43 = vld [vmem:[%s915_s1 + $0x220] sm:$0xff]  ;;  %v121_v44 = vld [vmem:[%s915_s1 + $0x2a8] sm:$0xff] }
  0x34   :  { %262 = vmatpush.msrb.mxu0 %v106_v34  ;;  %281 = vmatpush.msrb.mxu1 %v123_v35  ;;  %v154_v41 = vld [vmem:[%s915_s1 + $0x3b0] sm:$0xff]  ;;  %v136_v45 = vld [vmem:[%s915_s1 + $0x320] sm:$0xff]  ;;  %v153_v46 = vld [vmem:[%s915_s1 + $0x3a8] sm:$0xff] }
  0x35   :  { %302 = vmatpush.msrb.mxu2 %v138_v36  ;;  %321 = vmatpush.msrb.mxu3 %v155_v37  ;;  %v167_v42 = vld [vmem:[%s914_s0 + $0x10] sm:$0xff]  ;;  %v165_v47 = vld [vmem:[%s914_s0] sm:$0xff]  ;;  %v168_v48 = vld [vmem:[%s914_s0 + $0x18] sm:$0xff] }
  0x36   :  { %263 = vmatpush.msrb.mxu0 %v105_v38  ;;  %282 = vmatpush.msrb.mxu1 %v122_v39  ;;  %v103_v49 = vld [vmem:[%s915_s1 + $0x218] sm:$0xff]  ;;  %v120_v50 = vld [vmem:[%s915_s1 + $0x2a0] sm:$0xff]  ;;  %v166_v53 = vld [vmem:[%s914_s0 + $0x8] sm:$0xff] }
  0x37   :  { %303 = vmatpush.msrb.mxu2 %v137_v40  ;;  %322 = vmatpush.msrb.mxu3 %v154_v41  ;;  %v135_v51 = vld [vmem:[%s915_s1 + $0x318] sm:$0xff]  ;;  %v152_v52 = vld [vmem:[%s915_s1 + $0x3a0] sm:$0xff]  ;;  %v102_v54 = vld [vmem:[%s915_s1 + $0x210] sm:$0xff] }
  0x38   :  { %229 = vmatmul.f32.vlgmr.msra.gmra.mxu2 %v167_v42  ;;  %264 = vmatpush.msrb.mxu0 %v104_v43  ;;  %v119_v55 = vld [vmem:[%s915_s1 + $0x298] sm:$0xff]  ;;  %v134_v56 = vld [vmem:[%s915_s1 + $0x310] sm:$0xff]  ;;  %v101_v58 = vld [vmem:[%s915_s1 + $0x208] sm:$0xff] }
  0x39   :  { %283 = vmatpush.msrb.mxu1 %v121_v44  ;;  %304 = vmatpush.msrb.mxu2 %v136_v45  ;;  %v151_v57 = vld [vmem:[%s915_s1 + $0x398] sm:$0xff]  ;;  %v118_v59 = vld [vmem:[%s915_s1 + $0x290] sm:$0xff]  ;;  %v133_v60 = vld [vmem:[%s915_s1 + $0x308] sm:$0xff] }
  0x3a   :  { %323 = vmatpush.msrb.mxu3 %v153_v46  ;;  %189 = vmatmul.f32.vlgmr.msra.gmra.mxu0 %v165_v47  ;;  %v150_v61 = vld [vmem:[%s915_s1 + $0x390] sm:$0xff]  ;;  %v100_v62 = vld [vmem:[%s915_s1 + $0x200] sm:$0xff]  ;;  %v117_v63 = vld [vmem:[%s915_s1 + $0x288] sm:$0xff] }
  0x3b   :  { %249 = vmatmul.f32.vlgmr.msra.gmra.mxu3 %v168_v48  ;;  %265 = vmatpush.msrb.mxu0 %v103_v49  ;;  %v132_v0 = vld [vmem:[%s915_s1 + $0x300] sm:$0xff]  ;;  %v149_v1 = vld [vmem:[%s915_s1 + $0x388] sm:$0xff]  ;;  %v171_v3 = vld [vmem:[%s914_s0 + $0x30] sm:$0xff] }
  0x3c   :  { %284 = vmatpush.msrb.mxu1 %v120_v50  ;;  %305 = vmatpush.msrb.mxu2 %v135_v51  ;;  %v169_v2 = vld [vmem:[%s914_s0 + $0x20] sm:$0xff]  ;;  %v170_v6 = vld [vmem:[%s914_s0 + $0x28] sm:$0xff]  ;;  %v172_v7 = vld [vmem:[%s914_s0 + $0x38] sm:$0xff] }
  0x3d   :  { %324 = vmatpush.msrb.mxu3 %v152_v52  ;;  %209 = vmatmul.f32.vlgmr.msra.gmra.mxu1 %v166_v53  ;;  %v116_v4 = vld [vmem:[%s915_s1 + $0x280] sm:$0xff]  ;;  %v348_v11 = vld [vmem:[%s918_s4 + $0x18] sm:$0xff]  ;;  %v347_v12 = vld [vmem:[%s918_s4 + $0x10] sm:$0xff] }
  0x3e   :  { %266 = vmatpush.msrb.mxu0 %v102_v54  ;;  %285 = vmatpush.msrb.mxu1 %v119_v55  ;;  %v148_v5 = vld [vmem:[%s915_s1 + $0x380] sm:$0xff]  ;;  %v346_v13 = vld [vmem:[%s918_s4 + $0x8] sm:$0xff] }
  0x3f   :  { %306 = vmatpush.msrb.mxu2 %v134_v56  ;;  %325 = vmatpush.msrb.mxu3 %v151_v57  ;;  %v27_v8 = vld [vmem:[%s916_s2] sm:$0x1] }
  0x40   :  { %267 = vmatpush.msrb.mxu0 %v101_v58  ;;  %286 = vmatpush.msrb.mxu1 %v118_v59  ;;  %v28_v9 = vsub.f32 0.0, %v27_v8  ;;  %v345_v14 = vld [vmem:[%s918_s4] sm:$0xff] }
  0x41   :  { %307 = vmatpush.msrb.mxu2 %v133_v60  ;;  %326 = vmatpush.msrb.mxu3 %v150_v61  ;;  %v413_v32 = vld [vmem:[%s917_s3] ss:$0 sm:$0xff] }
  0x42   :  { %268 = vmatpush.msrb.mxu0 %v100_v62  ;;  %287 = vmatpush.msrb.mxu1 %v117_v63  ;;  %v30_v10 = vperm.slane %v28_v9, 0 }
  0x43   :  { %308 = vmatpush.msrb.mxu2 %v132_v0  ;;  %327 = vmatpush.msrb.mxu3 %v149_v1 }
  0x44   :  { %269 = vmatmul.f32.vlgmr.msrb.gmra.mxu0 %v169_v2  ;;  %309 = vmatmul.f32.vlgmr.msrb.gmra.mxu2 %v171_v3  ;;  %33 = vst.msk [vmem:[#allocation2] sm:$0xff] %vm32_vm0, %v30_v10 }
  0x45   :  { %288 = vmatpush.msrb.mxu1 %v116_v4  ;;  %328 = vmatpush.msrb.mxu3 %v148_v5 }
  0x46   :  { %289 = vmatmul.f32.vlgmr.msrb.gmra.mxu1 %v170_v6  ;;  %329 = vmatmul.f32.vlgmr.msrb.gmra.mxu3 %v172_v7 }
  0x47   :  { %364 = vmatpush.msra.mxu0 %v348_v11 }
  0x49   :  { %365 = vmatpush.msra.mxu0 %v347_v12 }
  0x4b   :  { %366 = vmatpush.msra.mxu0 %v346_v13  ;;  %v164_v28 = vld [vmem:[#allocation2] sm:$0xff] }
  0x4d   :  { %367 = vmatpush.msra.mxu0 %v345_v14 }
  0xb7   :  { %v190_v15 = vpop.f32.mrf.mxu0 }
  0xba   :  { %v210_v16 = vpop.f32.mrf.mxu1 }
  0xbb   :  { %v211_v17 = vadd.f32 %v210_v16, %v190_v15  ;;  %v230_v18 = vpop.f32.mrf.mxu2 }
  0xbd   :  { %v231_v19 = vadd.f32 %v230_v18, %v211_v17 }
  0xbe   :  { %v250_v20 = vpop.f32.mrf.mxu3 }
  0xbf   :  { %v251_v21 = vadd.f32 %v250_v20, %v231_v19 }
  0xc1   :  { %v270_v22 = vpop.f32.mrf.mxu0 }
  0xc2   :  { %v271_v23 = vadd.f32 %v270_v22, %v251_v21 }
  0xc3   :  { %v290_v24 = vpop.f32.mrf.mxu1 }
  0xc4   :  { %v291_v25 = vadd.f32 %v290_v24, %v271_v23 }
  0xc7   :  { %v310_v26 = vpop.f32.mrf.mxu2 }
  0xc8   :  { %v311_v27 = vadd.f32 %v310_v26, %v291_v25 }
  0xc9   :  { %v330_v29 = vpop.f32.mrf.mxu3 }
  0xca   :  { %v331_v30 = vadd.f32 %v330_v29, %v311_v27 }
  0xcc   :  { %v333_v31 = vadd.f32 %v331_v30, %v164_v28 }
  0xce   :  { %335 = vst.msk [vmem:[#allocation2] sm:$0xff] %vm32_vm0, %v333_v31 }
  0xcf   :  { %401 = dma.vmem_to_hbm [thread:$0]  %s397_s14, 128, %s399_s17, [#allocation3]  }
  0xd5   :  { %v339_v33 = vld [vmem:[#allocation2] sm:$0xff] }
  0xd6   :  { %v344_v34 = vsub.f32 %v339_v33, %v413_v32 }
  0xd8   :  { %411 = vmatmul.msk.f32.vlgmr.msra.gmra.mxu0 %vm32_vm0, %v344_v34 }
 0x155   :  { %v369_v35 = vpop.f32.mrf.mxu0 }
 0x156   :  { %v372_v36 = vmul.f32 %v369_v35, %v344_v34 }
 0x158   :  { %v373_v37 = vsel %vm32_vm0, %v372_v36, 0.0 }
 0x159   :  { %374 = vadd.xlane.f32.xlu0 %v373_v37 }
 0x1cc   :  { %v375_v38 = vpop.xlane.xlu0 %374 }
 0x1cd   :  { %v376_v39 = vmax.f32 %v375_v38, 0.0 }
 0x1cf   :  { %414 = vrsqrt.f32 %v376_v39  ;;  %vm384_vm1 = vcmp.eq.f32.partialorder %v376_v39, inf  ;;  %v387_v47 = vand.u32 2147483648, %v376_v39  ;;  %vm386_vm3 = vcmp.eq.f32.partialorder %v376_v39, 0.0 }
 0x1d5   :  { %v415_v40 = vpop.eup %414 }
 0x1d6   :  { %v378_v41 = vmul.f32 %v415_v40, %v376_v39 }
 0x1d8   :  { %v379_v42 = vmul.f32 %v415_v40, %v378_v41 }
 0x1da   :  { %v380_v43 = vmul.f32 0.5, %v379_v42 }
 0x1dc   :  { %v381_v44 = vsub.f32 1.5, %v380_v43 }
 0x1de   :  { %v382_v45 = vmul.f32 %v415_v40, %v381_v44 }
 0x1e0   :  { %v383_v46 = vmul.f32 %v382_v45, %v376_v39 }
 0x1e2   :  { %v385_v48 = vsel %vm384_vm1, %v376_v39, %v383_v46 }
 0x1e3   :  { %v388_v49 = vsel %vm386_vm3, %v387_v47, %v385_v48 }
 0x1e4   :  { %390 = vst.msk [vmem:[%s920_s6] sm:$0xff] %vm389_vm2, %v388_v49 }
 0x1e5   :  { %440 = dma.done.wait [#allocation3], 128  }
 0x1e6   :  { %441 = vsyncadd [#allocation3], 4294967168 }
 0x1e7   :  { %410 = vsyncpa [#allocation3], 1 }

</bundles_post_ra>
